<compile_context>
chip_gen: v7x
topology: tpu7x:2x2x1
jax: 0.10.0
libtpu: 0.0.40
codegen_flags: <defaults>
</compile_context>

<pallas_src>
import jax
import jax.numpy as jnp
from jax.experimental import pallas as pl
from jax.experimental.pallas import tpu as pltpu

N_HIDDEN = 7      # matches the PyTorch script's n_hidden = 7
LANE = 128        # TPU lane width
SUBLANE = 8       # f32 sublane tiling


def mlp_kernel(w1_ref, b1_ref, w2_ref, b2_ref, x_ref, o_ref):
    # w1_ref/b1_ref/w2_ref: (hid,) f32 in SMEM; b2_ref: (1,) f32 in SMEM.
    # x_ref / o_ref: (block_rows, 128) lane-dense f32 tiles in VMEM.
    x = x_ref[...]
    hid = w1_ref.shape[0]                      # static -> loop fully unrolls
    acc = jnp.zeros_like(x)
    for j in range(hid):                       # 7 VPU f32 FMA + ReLU chains, no MXU
        h = jnp.maximum(x * w1_ref[j] + b1_ref[j], 0.0)
        acc = acc + w2_ref[j] * h
    o_ref[...] = (acc + b2_ref[0]).astype(o_ref.dtype)


def regressor_forward(x, w1, b1, w2, b2, *, block_rows=512):
    """y = relu(x @ w1 + b1) @ w2 + b2.  x: (N,1) f32, w1: (1,hid), w2: (hid,1)."""
    N = x.shape[0]
    hid = w1.shape[1]

    # Parameters as flat scalar vectors -> SMEM (no padded weight tiles).
    w1f = w1.reshape(hid).astype(jnp.float32)
    b1f = b1.reshape(hid).astype(jnp.float32)
    w2f = w2.reshape(hid).astype(jnp.float32)
    b2f = b2.reshape(1).astype(jnp.float32)

    # Lane-dense layout: pack the N scalars into a (rows_p, 128) slab with
    # rows_p a multiple of both the sublane count and the block size.
    rows = pl.cdiv(N, LANE)
    rows_p = max(SUBLANE, pl.cdiv(rows, SUBLANE) * SUBLANE)
    block_rows = min(block_rows, rows_p)
    rows_p = pl.cdiv(rows_p, block_rows) * block_rows
    total = rows_p * LANE
    xp = (jnp.zeros((total,), jnp.float32)
             .at[:N].set(x.reshape(-1).astype(jnp.float32))
             .reshape(rows_p, LANE))

    grid = (rows_p // block_rows,)             # -> (1,) for N=300
    out = pl.pallas_call(
        mlp_kernel,
        out_shape=jax.ShapeDtypeStruct((rows_p, LANE), jnp.float32),
        grid_spec=pltpu.PrefetchScalarGridSpec(
            num_scalar_prefetch=0,
            grid=grid,
            in_specs=[
                pl.BlockSpec(memory_space=pltpu.MemorySpace.SMEM),   # w1 (hid,)
                pl.BlockSpec(memory_space=pltpu.MemorySpace.SMEM),   # b1 (hid,)
                pl.BlockSpec(memory_space=pltpu.MemorySpace.SMEM),   # w2 (hid,)
                pl.BlockSpec(memory_space=pltpu.MemorySpace.SMEM),   # b2 (1,)
                pl.BlockSpec((block_rows, LANE), lambda i: (i, 0)),  # x slab (lane-dense)
            ],
            out_specs=pl.BlockSpec((block_rows, LANE), lambda i: (i, 0)),
        ),
        compiler_params=pltpu.CompilerParams(
            dimension_semantics=("parallel",)),   # only >1 step if N grows large
    )(w1f, b1f, w2f, b2f, xp)

    # Padded tail elements compute junk (relu(b1)*w2+b2) but are sliced off here.
    return out.reshape(-1)[:N].reshape(N, 1)


if __name__ == "__main__":
    key = jax.random.PRNGKey(0)
    k1, k2, k3, k4 = jax.random.split(key, 4)

    # Deterministic parameter init (PyTorch Linear default: U(-1/sqrt(fan_in), +)).
    bound1 = 1.0                      # fan_in = 1
    bound2 = 1.0 / (N_HIDDEN ** 0.5)  # fan_in = n_hidden
    w1 = jax.random.uniform(k1, (1, N_HIDDEN), jnp.float32, -bound1, bound1)
    b1 = jax.random.uniform(k2, (N_HIDDEN,), jnp.float32, -bound1, bound1)
    w2 = jax.random.uniform(k3, (N_HIDDEN, 1), jnp.float32, -bound2, bound2)
    b2 = jax.random.uniform(k4, (1,), jnp.float32, -bound2, bound2)

    # Input mirrors torch.unsqueeze(torch.linspace(-10, 10, 300), dim=1) -> (300, 1)
    x = jnp.linspace(-10.0, 10.0, 300, dtype=jnp.float32)[:, None]

    y = regressor_forward(x, w1, b1, w2, b2)
    jax.block_until_ready(y)

    # Pure-JAX reference check of the forward semantics.
    y_ref = jnp.maximum(x @ w1 + b1[None, :], 0.0) @ w2 + b2[None, :]
    assert y.shape == (300, 1)
    assert jnp.allclose(y, y_ref, atol=1e-5, rtol=1e-5)

    print("KERNEL_OK")
</pallas_src>

<mosaic_0001>
module attributes {stable_mosaic.version = 11 : i64} {
  func.func @mlp_kernel(%arg0: i32, %arg1: memref<7xf32, #tpu.memory_space<smem>>, %arg2: memref<7xf32, #tpu.memory_space<smem>>, %arg3: memref<7xf32, #tpu.memory_space<smem>>, %arg4: memref<1xf32, #tpu.memory_space<smem>>, %arg5: memref<8x128xf32, #tpu.memory_space<vmem>>, %arg6: memref<8x128xf32, #tpu.memory_space<vmem>>) attributes {dimension_semantics = [#tpu.dimension_semantics<parallel>], iteration_bounds = array<i64: 1>, scalar_prefetch = 0 : i64, scratch_operands = 0 : i64, tpu.core_type = #tpu.core_type<tc>, window_params = [{transform_indices = @transform_0, window_bounds = array<i64: 7>}, {transform_indices = @transform_1, window_bounds = array<i64: 7>}, {transform_indices = @transform_2, window_bounds = array<i64: 7>}, {transform_indices = @transform_3, window_bounds = array<i64: 1>}, {transform_indices = @transform_4, window_bounds = array<i64: 8, 128>}, {transform_indices = @transform_5, window_bounds = array<i64: 8, 128>}]} {
    %c0 = arith.constant 0 : index
    %c0_0 = arith.constant 0 : index
    %0 = vector.load %arg5[%c0, %c0_0] : memref<8x128xf32, #tpu.memory_space<vmem>>, vector<8x128xf32>
    %cst = arith.constant 0.000000e+00 : f32
    %1 = vector.broadcast %cst : f32 to vector<8x128xf32>
    %c0_1 = arith.constant 0 : index
    %2 = memref.load %arg1[%c0_1] : memref<7xf32, #tpu.memory_space<smem>>
    %3 = vector.broadcast %2 : f32 to vector<8x128xf32>
    %4 = arith.mulf %0, %3 : vector<8x128xf32>
    %c0_2 = arith.constant 0 : index
    %5 = memref.load %arg2[%c0_2] : memref<7xf32, #tpu.memory_space<smem>>
    %6 = vector.broadcast %5 : f32 to vector<8x128xf32>
    %7 = arith.addf %4, %6 : vector<8x128xf32>
    %cst_3 = arith.constant 0.000000e+00 : f32
    %8 = vector.broadcast %cst_3 : f32 to vector<8x128xf32>
    %9 = arith.maximumf %7, %8 : vector<8x128xf32>
    %c0_4 = arith.constant 0 : index
    %10 = memref.load %arg3[%c0_4] : memref<7xf32, #tpu.memory_space<smem>>
    %11 = vector.broadcast %10 : f32 to vector<8x128xf32>
    %12 = arith.mulf %11, %9 : vector<8x128xf32>
    %13 = arith.addf %1, %12 : vector<8x128xf32>
    %c1 = arith.constant 1 : index
    %14 = memref.load %arg1[%c1] : memref<7xf32, #tpu.memory_space<smem>>
    %15 = vector.broadcast %14 : f32 to vector<8x128xf32>
    %16 = arith.mulf %0, %15 : vector<8x128xf32>
    %c1_5 = arith.constant 1 : index
    %17 = memref.load %arg2[%c1_5] : memref<7xf32, #tpu.memory_space<smem>>
    %18 = vector.broadcast %17 : f32 to vector<8x128xf32>
    %19 = arith.addf %16, %18 : vector<8x128xf32>
    %cst_6 = arith.constant 0.000000e+00 : f32
    %20 = vector.broadcast %cst_6 : f32 to vector<8x128xf32>
    %21 = arith.maximumf %19, %20 : vector<8x128xf32>
    %c1_7 = arith.constant 1 : index
    %22 = memref.load %arg3[%c1_7] : memref<7xf32, #tpu.memory_space<smem>>
    %23 = vector.broadcast %22 : f32 to vector<8x128xf32>
    %24 = arith.mulf %23, %21 : vector<8x128xf32>
    %25 = arith.addf %13, %24 : vector<8x128xf32>
    %c2 = arith.constant 2 : index
    %26 = memref.load %arg1[%c2] : memref<7xf32, #tpu.memory_space<smem>>
    %27 = vector.broadcast %26 : f32 to vector<8x128xf32>
    %28 = arith.mulf %0, %27 : vector<8x128xf32>
    %c2_8 = arith.constant 2 : index
    %29 = memref.load %arg2[%c2_8] : memref<7xf32, #tpu.memory_space<smem>>
    %30 = vector.broadcast %29 : f32 to vector<8x128xf32>
    %31 = arith.addf %28, %30 : vector<8x128xf32>
    %cst_9 = arith.constant 0.000000e+00 : f32
    %32 = vector.broadcast %cst_9 : f32 to vector<8x128xf32>
    %33 = arith.maximumf %31, %32 : vector<8x128xf32>
    %c2_10 = arith.constant 2 : index
    %34 = memref.load %arg3[%c2_10] : memref<7xf32, #tpu.memory_space<smem>>
    %35 = vector.broadcast %34 : f32 to vector<8x128xf32>
    %36 = arith.mulf %35, %33 : vector<8x128xf32>
    %37 = arith.addf %25, %36 : vector<8x128xf32>
    %c3 = arith.constant 3 : index
    %38 = memref.load %arg1[%c3] : memref<7xf32, #tpu.memory_space<smem>>
    %39 = vector.broadcast %38 : f32 to vector<8x128xf32>
    %40 = arith.mulf %0, %39 : vector<8x128xf32>
    %c3_11 = arith.constant 3 : index
    %41 = memref.load %arg2[%c3_11] : memref<7xf32, #tpu.memory_space<smem>>
    %42 = vector.broadcast %41 : f32 to vector<8x128xf32>
    %43 = arith.addf %40, %42 : vector<8x128xf32>
    %cst_12 = arith.constant 0.000000e+00 : f32
    %44 = vector.broadcast %cst_12 : f32 to vector<8x128xf32>
    %45 = arith.maximumf %43, %44 : vector<8x128xf32>
    %c3_13 = arith.constant 3 : index
    %46 = memref.load %arg3[%c3_13] : memref<7xf32, #tpu.memory_space<smem>>
    %47 = vector.broadcast %46 : f32 to vector<8x128xf32>
    %48 = arith.mulf %47, %45 : vector<8x128xf32>
    %49 = arith.addf %37, %48 : vector<8x128xf32>
    %c4 = arith.constant 4 : index
    %50 = memref.load %arg1[%c4] : memref<7xf32, #tpu.memory_space<smem>>
    %51 = vector.broadcast %50 : f32 to vector<8x128xf32>
    %52 = arith.mulf %0, %51 : vector<8x128xf32>
    %c4_14 = arith.constant 4 : index
    %53 = memref.load %arg2[%c4_14] : memref<7xf32, #tpu.memory_space<smem>>
    %54 = vector.broadcast %53 : f32 to vector<8x128xf32>
    %55 = arith.addf %52, %54 : vector<8x128xf32>
    %cst_15 = arith.constant 0.000000e+00 : f32
    %56 = vector.broadcast %cst_15 : f32 to vector<8x128xf32>
    %57 = arith.maximumf %55, %56 : vector<8x128xf32>
    %c4_16 = arith.constant 4 : index
    %58 = memref.load %arg3[%c4_16] : memref<7xf32, #tpu.memory_space<smem>>
    %59 = vector.broadcast %58 : f32 to vector<8x128xf32>
    %60 = arith.mulf %59, %57 : vector<8x128xf32>
    %61 = arith.addf %49, %60 : vector<8x128xf32>
    %c5 = arith.constant 5 : index
    %62 = memref.load %arg1[%c5] : memref<7xf32, #tpu.memory_space<smem>>
    %63 = vector.broadcast %62 : f32 to vector<8x128xf32>
    %64 = arith.mulf %0, %63 : vector<8x128xf32>
    %c5_17 = arith.constant 5 : index
    %65 = memref.load %arg2[%c5_17] : memref<7xf32, #tpu.memory_space<smem>>
    %66 = vector.broadcast %65 : f32 to vector<8x128xf32>
    %67 = arith.addf %64, %66 : vector<8x128xf32>
    %cst_18 = arith.constant 0.000000e+00 : f32
    %68 = vector.broadcast %cst_18 : f32 to vector<8x128xf32>
    %69 = arith.maximumf %67, %68 : vector<8x128xf32>
    %c5_19 = arith.constant 5 : index
    %70 = memref.load %arg3[%c5_19] : memref<7xf32, #tpu.memory_space<smem>>
    %71 = vector.broadcast %70 : f32 to vector<8x128xf32>
    %72 = arith.mulf %71, %69 : vector<8x128xf32>
    %73 = arith.addf %61, %72 : vector<8x128xf32>
    %c6 = arith.constant 6 : index
    %74 = memref.load %arg1[%c6] : memref<7xf32, #tpu.memory_space<smem>>
    %75 = vector.broadcast %74 : f32 to vector<8x128xf32>
    %76 = arith.mulf %0, %75 : vector<8x128xf32>
    %c6_20 = arith.constant 6 : index
    %77 = memref.load %arg2[%c6_20] : memref<7xf32, #tpu.memory_space<smem>>
    %78 = vector.broadcast %77 : f32 to vector<8x128xf32>
    %79 = arith.addf %76, %78 : vector<8x128xf32>
    %cst_21 = arith.constant 0.000000e+00 : f32
    %80 = vector.broadcast %cst_21 : f32 to vector<8x128xf32>
    %81 = arith.maximumf %79, %80 : vector<8x128xf32>
    %c6_22 = arith.constant 6 : index
    %82 = memref.load %arg3[%c6_22] : memref<7xf32, #tpu.memory_space<smem>>
    %83 = vector.broadcast %82 : f32 to vector<8x128xf32>
    %84 = arith.mulf %83, %81 : vector<8x128xf32>
    %85 = arith.addf %73, %84 : vector<8x128xf32>
    %c0_23 = arith.constant 0 : index
    %86 = memref.load %arg4[%c0_23] : memref<1xf32, #tpu.memory_space<smem>>
    %87 = vector.broadcast %86 : f32 to vector<8x128xf32>
    %88 = arith.addf %85, %87 : vector<8x128xf32>
    %c0_24 = arith.constant 0 : index
    %c0_25 = arith.constant 0 : index
    %89 = vector.load %arg6[%c0_24, %c0_25] : memref<8x128xf32, #tpu.memory_space<vmem>>, vector<8x128xf32>
    tpu.vector_store %arg6[%c0_24, %c0_25], %88 {strides = array<i32>} : memref<8x128xf32, #tpu.memory_space<vmem>>, vector<8x128xf32>,
    return
  }
  func.func @transform_0(%arg0: i32) -> i32 {
    %c0_i32 = arith.constant 0 : i32
    %c0_i32_0 = arith.constant 0 : i32
    return %c0_i32 : i32
  }
  func.func @transform_1(%arg0: i32) -> i32 {
    %c0_i32 = arith.constant 0 : i32
    %c0_i32_0 = arith.constant 0 : i32
    return %c0_i32 : i32
  }
  func.func @transform_2(%arg0: i32) -> i32 {
    %c0_i32 = arith.constant 0 : i32
    %c0_i32_0 = arith.constant 0 : i32
    return %c0_i32 : i32
  }
  func.func @transform_3(%arg0: i32) -> i32 {
    %c0_i32 = arith.constant 0 : i32
    %c0_i32_0 = arith.constant 0 : i32
    return %c0_i32 : i32
  }
  func.func @transform_4(%arg0: i32) -> (i32, i32) {
    %c0_i32 = arith.constant 0 : i32
    %c0_i32_0 = arith.constant 0 : i32
    return %arg0, %c0_i32 : i32, i32
  }
  func.func @transform_5(%arg0: i32) -> (i32, i32) {
    %c0_i32 = arith.constant 0 : i32
    %c0_i32_0 = arith.constant 0 : i32
    return %arg0, %c0_i32 : i32, i32
  }
}

</mosaic_0001>

<bundles_post_ra>
// kernel: tpu_custom_call.1
= control target key start
LH: loop header
LB: loop body
LE: loop exit
PB: predicated region body
PF: predicated region fallthrough
CT: control target
= control target key end

     0   :  { %11 = vsyncpa [#allocation5], 0  ;;  %s348_s0 = inlined_call_operand.vmem [shape: f32[7], index: 0, kind: input, shape index: {}]   ;;  %s349_s1 = inlined_call_operand.vmem [shape: f32[7], index: 1, kind: input, shape index: {}]   ;;  %s350_s2 = inlined_call_operand.vmem [shape: f32[7], index: 2, kind: input, shape index: {}]   ;;  %s351_s3 = inlined_call_operand.<no memory space> [shape: f32[1], index: 3, kind: input, shape index: {}]   ;;  %s352_s4 = inlined_call_operand.vmem [shape: f32[8,128], index: 4, kind: input, shape index: {}]   ;;  %s353_s5 = inlined_call_operand.hbm [shape: f32[8,128], index: 5, kind: output, shape index: {}]  }
   0x1   :  { %12 = vsyncpa [#allocation7], 0  ;;  %s30_s20 = sshll.u32 %s349_s1, 4  ;;  %s31_s20 = int_to_ptr.vmem [resolvable:$true] %s30_s20 }
   0x2   :  { %13 = vsyncpa [#allocation4], 0  ;;  %s20_s23 = sshll.u32 %s348_s0, 4  ;;  %s178_s24 = scalar_lea.vmem %s31_s20, 16  ;;  %s21_s23 = int_to_ptr.vmem [resolvable:$true] %s20_s23 }
   0x3   :  { %p179_p0 = scmp.ne.s32.totalorder %s31_s20, %s178_s24  ;;  %p183_p1 = scmp.lt.s32.totalorder %s31_s20, %s31_s20 }
   0x4   :  { %p184_p2 = scmp.lt.s32.totalorder %s178_s24, %s178_s24 }
   0x6   :  { %p185_p3 = por %p184_p2, %p183_p1 }
   0x8   :  { %p186_p4 = pnand %p185_p3, %p179_p0 }
   0xa   :  { %189 = shalt.err (!%p186_p4)
}
   0xb   :  { %s242_s25 = smov [#allocation6]   ;;  %s190_s26 = scalar_lea.vmem %s21_s23, 16 }
   0xc   :  { %33 = dma.vmem_to_smem %s31_s20, 16, %s242_s25, [#allocation7]  }
   0xd   :  { %p191_p5 = scmp.ne.s32.totalorder %s21_s23, %s190_s26  ;;  %p195_p6 = scmp.lt.s32.totalorder %s21_s23, %s21_s23 }
   0xe   :  { %p196_p7 = scmp.lt.s32.totalorder %s190_s26, %s190_s26 }
  0x10   :  { %p197_p8 = por %p196_p7, %p195_p6 }
  0x12   :  { %p198_p9 = pnand %p197_p8, %p191_p5 }
  0x14   :  { %201 = shalt.err (!%p198_p9)
}
  0x15   :  { %s243_s1 = smov [#allocation3]   ;;  %s40_s28 = sshll.u32 %s350_s2, 4  ;;  %s41_s28 = int_to_ptr.vmem [resolvable:$true] %s40_s28 }
  0x16   :  { %23 = dma.vmem_to_smem %s21_s23, 16, %s243_s1, [#allocation5]  }
  0x17   :  { %s202_s29 = scalar_lea.vmem %s41_s28, 16  ;;  %p207_p11 = scmp.lt.s32.totalorder %s41_s28, %s41_s28 }
  0x18   :  { %p203_p10 = scmp.ne.s32.totalorder %s41_s28, %s202_s29  ;;  %p208_p12 = scmp.lt.s32.totalorder %s202_s29, %s202_s29 }
  0x1a   :  { %p209_p13 = por %p208_p12, %p207_p11 }
  0x1c   :  { %p210_p0 = pnand %p209_p13, %p203_p10 }
  0x1e   :  { %213 = shalt.err (!%p210_p0)
}
  0x1f   :  { %s244_s30 = smov [#allocation8]  }
  0x20   :  { %43 = dma.vmem_to_smem %s41_s28, 16, %s244_s30, [#allocation7]  }
  0x21   :  { %236 = dma.done.wait [#allocation5], 16  }
  0x22   :  { %237 = vsyncadd [#allocation5], 4294967280 }
  0x23   :  { %238 = dma.done.wait [#allocation7], 32  }
  0x24   :  { %239 = vsyncadd [#allocation7], 4294967264 }
  0x25   :  { %57 = sfence }
  0x26   :  { %s59_s6 = sld [smem:[#allocation3]]  ;;  %s156_s2 = sld [smem:[#allocation3 + $0x1]]  ;;  %v58_v0 = vld [vmem:[%s352_s4] sm:$0xff]  ;;  %v137_v55 = vstv %s351_s3 }
  0x27   :  { %s62_s7 = sld [smem:[#allocation6]]  ;;  %s157_s9 = sld [smem:[#allocation6 + $0x1]] }
  0x28   :  { %s285_s8 = sld [smem:[#allocation8]]  ;;  %s287_s10 = sld [smem:[#allocation8 + $0x1]] }
  0x29   :  { %s159_s11 = sld [smem:[#allocation3 + $0x2]]  ;;  %s162_s16 = sld [smem:[#allocation3 + $0x3]] }
  0x2a   :  { %s289_s12 = sld [smem:[#allocation6 + $0x2]]  ;;  %s296_s17 = sld [smem:[#allocation6 + $0x3]] }
  0x2b   :  { %s294_s15 = sld [smem:[#allocation8 + $0x2]]  ;;  %s298_s18 = sld [smem:[#allocation8 + $0x3]] }
  0x2c   :  { %v60_v1 = vstv %s59_s6  ;;  %s300_s19 = sld [smem:[#allocation3 + $0x4]]  ;;  %v71_v4 = vstv %s156_s2  ;;  %s306_s4 = sld [smem:[#allocation3 + $0x5]] }
  0x2d   :  { %v63_v2 = vstv %s62_s7  ;;  %s302_s20 = sld [smem:[#allocation6 + $0x4]]  ;;  %v61_v3 = vmul.f32 %v60_v1, %v58_v0  ;;  %v72_v5 = vmul.f32 %v71_v4, %v58_v0  ;;  %v74_v6 = vstv %s157_s9  ;;  %s308_s22 = sld [smem:[#allocation6 + $0x5]] }
  0x2e   :  { %s304_s21 = sld [smem:[#allocation8 + $0x4]]  ;;  %v67_v8 = vstv %s285_s8  ;;  %s312_s23 = sld [smem:[#allocation3 + $0x6]]  ;;  %v78_v12 = vstv %s287_s10 }
  0x2f   :  { %v64_v7 = vadd.f32 %v63_v2, %v61_v3  ;;  %v82_v9 = vstv %s159_s11  ;;  %s314_s24 = sld [smem:[#allocation6 + $0x6]]  ;;  %v75_v11 = vadd.f32 %v74_v6, %v72_v5  ;;  %v93_v14 = vstv %s162_s16  ;;  %s317_s25 = sld [smem:[#allocation8 + $0x5]] }
  0x30   :  { %v85_v10 = vstv %s289_s12  ;;  %v83_v13 = vmul.f32 %v82_v9, %v58_v0  ;;  %v94_v17 = vmul.f32 %v93_v14, %v58_v0  ;;  %v96_v18 = vstv %s296_s17  ;;  %s323_s26 = sld [smem:[#allocation8 + $0x6]]  ;;  %s245_s27 = smov [#allocation9]  }
  0x31   :  { %v65_v15 = vmax.f32 %v64_v7, 0.0  ;;  %v89_v16 = vstv %s294_s15  ;;  %v76_v19 = vmax.f32 %v75_v11, 0.0  ;;  %v100_v25 = vstv %s298_s18  ;;  %s146_s28 = sshll.u32 %s245_s27, 4  ;;  %s147_s28 = int_to_ptr.vmem [resolvable:$true] %s146_s28 }
  0x32   :  { %v86_v20 = vadd.f32 %v85_v10, %v83_v13  ;;  %v104_v21 = vstv %s300_s19  ;;  %v97_v24 = vadd.f32 %v96_v18, %v94_v17  ;;  %v115_v29 = vstv %s306_s4  ;;  %s214_s29 = scalar_lea.vmem %s147_s28, 128  ;;  %p219_p2 = scmp.lt.s32.totalorder %s147_s28, %s147_s28 }
  0x33   :  { %v107_v22 = vstv %s302_s20  ;;  %v68_v23 = vmul.f32 %v67_v8, %v65_v15  ;;  %v105_v26 = vmul.f32 %v104_v21, %v58_v0  ;;  %v79_v27 = vmul.f32 %v78_v12, %v76_v19  ;;  %p215_p1 = scmp.ne.s32.totalorder %s147_s28, %s214_s29  ;;  %p220_p3 = scmp.lt.s32.totalorder %s214_s29, %s214_s29 }
  0x34   :  { %v87_v28 = vmax.f32 %v86_v20, 0.0  ;;  %v118_v30 = vstv %s308_s22  ;;  %v98_v31 = vmax.f32 %v97_v24, 0.0  ;;  %v111_v33 = vstv %s304_s21 }
  0x35   :  { %v108_v32 = vadd.f32 %v107_v22, %v105_v26  ;;  %v116_v34 = vmul.f32 %v115_v29, %v58_v0  ;;  %v80_v35 = vadd.f32 %v79_v27, %v68_v23  ;;  %v126_v37 = vstv %s312_s23  ;;  %p221_p4 = por %p220_p3, %p219_p2 }
  0x36   :  { %v90_v36 = vmul.f32 %v89_v16, %v87_v28  ;;  %v129_v38 = vstv %s314_s24  ;;  %v101_v39 = vmul.f32 %v100_v25, %v98_v31  ;;  %v127_v42 = vmul.f32 %v126_v37, %v58_v0 }
  0x37   :  { %v109_v40 = vmax.f32 %v108_v32, 0.0  ;;  %v119_v41 = vadd.f32 %v118_v30, %v116_v34  ;;  %v122_v44 = vstv %s317_s25  ;;  %v133_v49 = vstv %s323_s26  ;;  %p222_p5 = pnand %p221_p4, %p215_p1 }
  0x38   :  { %v91_v43 = vadd.f32 %v90_v36, %v80_v35  ;;  %v130_v47 = vadd.f32 %v129_v38, %v127_v42 }
  0x39   :  { %v112_v45 = vmul.f32 %v111_v33, %v109_v40  ;;  %v120_v46 = vmax.f32 %v119_v41, 0.0 }
  0x3a   :  { %v102_v48 = vadd.f32 %v101_v39, %v91_v43  ;;  %v131_v51 = vmax.f32 %v130_v47, 0.0 }
  0x3b   :  { %v123_v50 = vmul.f32 %v122_v44, %v120_v46 }
  0x3c   :  { %v113_v52 = vadd.f32 %v112_v45, %v102_v48  ;;  %v134_v53 = vmul.f32 %v133_v49, %v131_v51 }
  0x3e   :  { %v124_v54 = vadd.f32 %v123_v50, %v113_v52 }
  0x40   :  { %v135_v56 = vadd.f32 %v134_v53, %v124_v54 }
  0x42   :  { %v138_v57 = vadd.f32 %v137_v55, %v135_v56 }
  0x44   :  { %139 = vst [vmem:[#allocation9] sm:$0xff] %v138_v57 }
  0x45   :  { %225 = shalt.err (!%p222_p5)
}
  0x46   :  { %s226_s7 = scalar_lea.hbm %s353_s5, 128 }
  0x47   :  { %p227_p6 = scmp.ne.s32.totalorder %s353_s5, %s226_s7  ;;  %p230_p7 = scmp.lt.u32.totalorder %s226_s7, %s353_s5 }
  0x49   :  { %p232_p8 = pnand %p230_p7, %p227_p6 }
  0x4b   :  { %235 = shalt.err (!%p232_p8)
}
  0x4c   :  { %149 = dma.vmem_to_hbm [thread:$0]  %s147_s28, 128, %s353_s5, [#allocation4]  }
  0x4d   :  { %240 = dma.done.wait [#allocation4], 128  }
  0x4e   :  { %241 = vsyncadd [#allocation4], 4294967168 }
  0x4f   :  { %153 = vsyncpa [#allocation4], 1 }
  0x50   :  { %154 = vsyncpa [#allocation5], 1 }
  0x51   :  { %155 = vsyncpa [#allocation7], 1 }

</bundles_post_ra>
